<compile_context>
chip_gen: v7x
topology: tpu7x:2x2x1
jax: 0.10.0
libtpu: 0.0.40
codegen_flags: <defaults>
</compile_context>

<pallas_src>
import functools

import jax
import jax.numpy as jnp
import numpy as np
from jax.experimental import pallas as pl
from jax.experimental.pallas import tpu as pltpu


def _bigram_gather_kernel(idx_smem, table_hbm, out_ref, row_buf, sems):
    # idx_smem  : (Np,)          int32   in SMEM (scalar prefetch)
    # table_hbm : (V, Vp)        f32     left in HBM (pl.ANY), DMA'd row by row
    # out_ref   : (row_tile, Vp) f32     lane-dense output block in VMEM
    # row_buf   : (row_tile, Vp) f32     VMEM scratch gather buffer
    # sems      : (row_tile,)    DMA semaphores
    rows = out_ref.shape[0]                      # static tile size
    base = pl.program_id(0) * rows

    # Read all token ids (cheap SMEM scalar loads) before touching the DMAs.
    toks = [idx_smem[base + r] for r in range(rows)]

    # Issue all row-gather DMAs, then wait; ~rows outstanding copies overlap.
    for r in range(rows):
        pltpu.make_async_copy(
            table_hbm.at[toks[r]],               # (Vp,) row at dynamic index
            row_buf.at[r],
            sems.at[r],
        ).start()
    for r in range(rows):
        pltpu.make_async_copy(
            table_hbm.at[0],                     # shape-only for the wait
            row_buf.at[r],
            sems.at[r],
        ).wait()

    # Single unmasked (row_tile, Vp) store.
    out_ref[...] = row_buf[...]


@functools.partial(jax.jit, static_argnames=("row_tile",))
def bigram_forward(idx, table, *, row_tile=8):
    """Pallas equivalent of BigramLanguageModel.forward.

    idx   : (B, T) integer token ids
    table : (V, V) float32 embedding table
    returns logits (B, T, V) float32
    """
    B, T = idx.shape
    V, C = table.shape
    N = B * T

    # Lane-pad the logit dim to a multiple of 128 (dense, unmasked stores).
    Vp = ((C + 127) // 128) * 128
    # Sublane-pad the flattened row count to a multiple of row_tile.
    Np = ((N + row_tile - 1) // row_tile) * row_tile

    idx_flat = idx.reshape(N).astype(jnp.int32)
    if Np != N:
        idx_flat = jnp.concatenate(
            [idx_flat, jnp.zeros((Np - N,), jnp.int32)])     # pad with token 0
    table_p = table if Vp == C else jnp.pad(table, ((0, 0), (0, Vp - C)))

    grid = (Np // row_tile,)

    out = pl.pallas_call(
        _bigram_gather_kernel,
        out_shape=jax.ShapeDtypeStruct((Np, Vp), table.dtype),
        grid_spec=pltpu.PrefetchScalarGridSpec(
            num_scalar_prefetch=1,                           # idx -> SMEM
            grid=grid,
            in_specs=[
                pl.BlockSpec(memory_space=pl.ANY),           # table stays in HBM
            ],
            out_specs=pl.BlockSpec((row_tile, Vp), lambda g, idx_ref: (g, 0)),
            scratch_shapes=[
                pltpu.VMEM((row_tile, Vp), table.dtype),     # gather buffer
                pltpu.SemaphoreType.DMA((row_tile,)),        # per-row DMA sems
            ],
        ),
        compiler_params=pltpu.CompilerParams(
            dimension_semantics=("parallel",),               # shard rows over TCs
        ),
    )(idx_flat, table_p)

    # Strip row/lane padding and restore (B, T, V).
    return out[:N, :C].reshape(B, T, C)


if __name__ == "__main__":
    # Tiny-shakespeare has 65 unique characters; use that vocab size.
    VOCAB = 65
    B, T = 2, 8

    key = jax.random.PRNGKey(0)
    k_tab, k_idx = jax.random.split(key)

    # nn.Embedding default init: N(0, 1)
    table = jax.random.normal(k_tab, (VOCAB, VOCAB), dtype=jnp.float32)
    idx = jax.random.randint(k_idx, (B, T), 0, VOCAB, dtype=jnp.int32)

    logits = bigram_forward(idx, table)
    logits = jax.block_until_ready(logits)

    # Reference: plain gather (what nn.Embedding does).
    ref = jnp.take(table, idx, axis=0)
    np.testing.assert_allclose(np.asarray(logits), np.asarray(ref),
                               rtol=1e-6, atol=1e-6)

    # TODO(synk): loss() / generate() are host-side training/sampling loops, not
    # part of forward; left out of the kernel by design.
    print("KERNEL_OK")
</pallas_src>

<mosaic_0001>
module attributes {stable_mosaic.version = 11 : i64} {
  func.func @_bigram_gather_kernel(%arg0: i32, %arg1: memref<16xi32, #tpu.memory_space<smem>>, %arg2: memref<65x128xf32, #tpu.memory_space<any>>, %arg3: memref<8x128xf32, #tpu.memory_space<vmem>>, %arg4: memref<8x128xf32, #tpu.memory_space<vmem>>, %arg5: memref<8x!tpu.dma_semaphore, #tpu.memory_space<semaphore_mem>>) attributes {dimension_semantics = [#tpu.dimension_semantics<parallel>], iteration_bounds = array<i64: 2>, scalar_prefetch = 1 : i64, scratch_operands = 2 : i64, tpu.core_type = #tpu.core_type<tc>, window_params = [{}, {transform_indices = @transform_1, window_bounds = array<i64: 8, 128>}]} {
    %c8_i32 = arith.constant 8 : i32
    %0 = arith.muli %arg0, %c8_i32 : i32
    %c0_i32 = arith.constant 0 : i32
    %1 = arith.addi %0, %c0_i32 : i32
    %2 = arith.index_cast %1 : i32 to index
    %3 = memref.load %arg1[%2] : memref<16xi32, #tpu.memory_space<smem>>
    %c1_i32 = arith.constant 1 : i32
    %4 = arith.addi %0, %c1_i32 : i32
    %5 = arith.index_cast %4 : i32 to index
    %6 = memref.load %arg1[%5] : memref<16xi32, #tpu.memory_space<smem>>
    %c2_i32 = arith.constant 2 : i32
    %7 = arith.addi %0, %c2_i32 : i32
    %8 = arith.index_cast %7 : i32 to index
    %9 = memref.load %arg1[%8] : memref<16xi32, #tpu.memory_space<smem>>
    %c3_i32 = arith.constant 3 : i32
    %10 = arith.addi %0, %c3_i32 : i32
    %11 = arith.index_cast %10 : i32 to index
    %12 = memref.load %arg1[%11] : memref<16xi32, #tpu.memory_space<smem>>
    %c4_i32 = arith.constant 4 : i32
    %13 = arith.addi %0, %c4_i32 : i32
    %14 = arith.index_cast %13 : i32 to index
    %15 = memref.load %arg1[%14] : memref<16xi32, #tpu.memory_space<smem>>
    %c5_i32 = arith.constant 5 : i32
    %16 = arith.addi %0, %c5_i32 : i32
    %17 = arith.index_cast %16 : i32 to index
    %18 = memref.load %arg1[%17] : memref<16xi32, #tpu.memory_space<smem>>
    %c6_i32 = arith.constant 6 : i32
    %19 = arith.addi %0, %c6_i32 : i32
    %20 = arith.index_cast %19 : i32 to index
    %21 = memref.load %arg1[%20] : memref<16xi32, #tpu.memory_space<smem>>
    %c7_i32 = arith.constant 7 : i32
    %22 = arith.addi %0, %c7_i32 : i32
    %23 = arith.index_cast %22 : i32 to index
    %24 = memref.load %arg1[%23] : memref<16xi32, #tpu.memory_space<smem>>
    %c0_i32_0 = arith.constant 0 : i32
    %c0_i32_1 = arith.constant 0 : i32
    %c0_i32_2 = arith.constant 0 : i32
    %25 = tpu.memref_slice %arg2[%3, %c0_i32_2] : memref<65x128xf32, #tpu.memory_space<any>> -> memref<1x128xf32, #tpu.memory_space<any>>
    %26 = tpu.memref_squeeze %25 : memref<1x128xf32, #tpu.memory_space<any>> -> memref<128xf32, #tpu.memory_space<any>>
    %c0_i32_3 = arith.constant 0 : i32
    %27 = tpu.memref_slice %arg4[%c0_i32_0, %c0_i32_3] : memref<8x128xf32, #tpu.memory_space<vmem>> -> memref<1x128xf32, #tpu.memory_space<vmem>>
    %28 = tpu.memref_squeeze %27 : memref<1x128xf32, #tpu.memory_space<vmem>> -> memref<128xf32, #tpu.memory_space<vmem>>
    %29 = tpu.memref_slice %arg5[%c0_i32_1] : memref<8x!tpu.dma_semaphore, #tpu.memory_space<semaphore_mem>> -> memref<1x!tpu.dma_semaphore, #tpu.memory_space<semaphore_mem>>
    %30 = tpu.memref_squeeze %29 : memref<1x!tpu.dma_semaphore, #tpu.memory_space<semaphore_mem>> -> memref<!tpu.dma_semaphore, #tpu.memory_space<semaphore_mem>>
    tpu.enqueue_dma source(%26 : memref<128xf32, #tpu.memory_space<any>>) target(%28 : memref<128xf32, #tpu.memory_space<vmem>>) target_semaphore(%30 : memref<!tpu.dma_semaphore, #tpu.memory_space<semaphore_mem>>)
    %c1_i32_4 = arith.constant 1 : i32
    %c1_i32_5 = arith.constant 1 : i32
    %c0_i32_6 = arith.constant 0 : i32
    %31 = tpu.memref_slice %arg2[%6, %c0_i32_6] : memref<65x128xf32, #tpu.memory_space<any>> -> memref<1x128xf32, #tpu.memory_space<any>>
    %32 = tpu.memref_squeeze %31 : memref<1x128xf32, #tpu.memory_space<any>> -> memref<128xf32, #tpu.memory_space<any>>
    %c0_i32_7 = arith.constant 0 : i32
    %33 = tpu.memref_slice %arg4[%c1_i32_4, %c0_i32_7] : memref<8x128xf32, #tpu.memory_space<vmem>> -> memref<1x128xf32, #tpu.memory_space<vmem>>
    %34 = tpu.memref_squeeze %33 : memref<1x128xf32, #tpu.memory_space<vmem>> -> memref<128xf32, #tpu.memory_space<vmem>>
    %35 = tpu.memref_slice %arg5[%c1_i32_5] : memref<8x!tpu.dma_semaphore, #tpu.memory_space<semaphore_mem>> -> memref<1x!tpu.dma_semaphore, #tpu.memory_space<semaphore_mem>>
    %36 = tpu.memref_squeeze %35 : memref<1x!tpu.dma_semaphore, #tpu.memory_space<semaphore_mem>> -> memref<!tpu.dma_semaphore, #tpu.memory_space<semaphore_mem>>
    tpu.enqueue_dma source(%32 : memref<128xf32, #tpu.memory_space<any>>) target(%34 : memref<128xf32, #tpu.memory_space<vmem>>) target_semaphore(%36 : memref<!tpu.dma_semaphore, #tpu.memory_space<semaphore_mem>>)
    %c2_i32_8 = arith.constant 2 : i32
    %c2_i32_9 = arith.constant 2 : i32
    %c0_i32_10 = arith.constant 0 : i32
    %37 = tpu.memref_slice %arg2[%9, %c0_i32_10] : memref<65x128xf32, #tpu.memory_space<any>> -> memref<1x128xf32, #tpu.memory_space<any>>
    %38 = tpu.memref_squeeze %37 : memref<1x128xf32, #tpu.memory_space<any>> -> memref<128xf32, #tpu.memory_space<any>>
    %c0_i32_11 = arith.constant 0 : i32
    %39 = tpu.memref_slice %arg4[%c2_i32_8, %c0_i32_11] : memref<8x128xf32, #tpu.memory_space<vmem>> -> memref<1x128xf32, #tpu.memory_space<vmem>>
    %40 = tpu.memref_squeeze %39 : memref<1x128xf32, #tpu.memory_space<vmem>> -> memref<128xf32, #tpu.memory_space<vmem>>
    %41 = tpu.memref_slice %arg5[%c2_i32_9] : memref<8x!tpu.dma_semaphore, #tpu.memory_space<semaphore_mem>> -> memref<1x!tpu.dma_semaphore, #tpu.memory_space<semaphore_mem>>
    %42 = tpu.memref_squeeze %41 : memref<1x!tpu.dma_semaphore, #tpu.memory_space<semaphore_mem>> -> memref<!tpu.dma_semaphore, #tpu.memory_space<semaphore_mem>>
    tpu.enqueue_dma source(%38 : memref<128xf32, #tpu.memory_space<any>>) target(%40 : memref<128xf32, #tpu.memory_space<vmem>>) target_semaphore(%42 : memref<!tpu.dma_semaphore, #tpu.memory_space<semaphore_mem>>)
    %c3_i32_12 = arith.constant 3 : i32
    %c3_i32_13 = arith.constant 3 : i32
    %c0_i32_14 = arith.constant 0 : i32
    %43 = tpu.memref_slice %arg2[%12, %c0_i32_14] : memref<65x128xf32, #tpu.memory_space<any>> -> memref<1x128xf32, #tpu.memory_space<any>>
    %44 = tpu.memref_squeeze %43 : memref<1x128xf32, #tpu.memory_space<any>> -> memref<128xf32, #tpu.memory_space<any>>
    %c0_i32_15 = arith.constant 0 : i32
    %45 = tpu.memref_slice %arg4[%c3_i32_12, %c0_i32_15] : memref<8x128xf32, #tpu.memory_space<vmem>> -> memref<1x128xf32, #tpu.memory_space<vmem>>
    %46 = tpu.memref_squeeze %45 : memref<1x128xf32, #tpu.memory_space<vmem>> -> memref<128xf32, #tpu.memory_space<vmem>>
    %47 = tpu.memref_slice %arg5[%c3_i32_13] : memref<8x!tpu.dma_semaphore, #tpu.memory_space<semaphore_mem>> -> memref<1x!tpu.dma_semaphore, #tpu.memory_space<semaphore_mem>>
    %48 = tpu.memref_squeeze %47 : memref<1x!tpu.dma_semaphore, #tpu.memory_space<semaphore_mem>> -> memref<!tpu.dma_semaphore, #tpu.memory_space<semaphore_mem>>
    tpu.enqueue_dma source(%44 : memref<128xf32, #tpu.memory_space<any>>) target(%46 : memref<128xf32, #tpu.memory_space<vmem>>) target_semaphore(%48 : memref<!tpu.dma_semaphore, #tpu.memory_space<semaphore_mem>>)
    %c4_i32_16 = arith.constant 4 : i32
    %c4_i32_17 = arith.constant 4 : i32
    %c0_i32_18 = arith.constant 0 : i32
    %49 = tpu.memref_slice %arg2[%15, %c0_i32_18] : memref<65x128xf32, #tpu.memory_space<any>> -> memref<1x128xf32, #tpu.memory_space<any>>
    %50 = tpu.memref_squeeze %49 : memref<1x128xf32, #tpu.memory_space<any>> -> memref<128xf32, #tpu.memory_space<any>>
    %c0_i32_19 = arith.constant 0 : i32
    %51 = tpu.memref_slice %arg4[%c4_i32_16, %c0_i32_19] : memref<8x128xf32, #tpu.memory_space<vmem>> -> memref<1x128xf32, #tpu.memory_space<vmem>>
    %52 = tpu.memref_squeeze %51 : memref<1x128xf32, #tpu.memory_space<vmem>> -> memref<128xf32, #tpu.memory_space<vmem>>
    %53 = tpu.memref_slice %arg5[%c4_i32_17] : memref<8x!tpu.dma_semaphore, #tpu.memory_space<semaphore_mem>> -> memref<1x!tpu.dma_semaphore, #tpu.memory_space<semaphore_mem>>
    %54 = tpu.memref_squeeze %53 : memref<1x!tpu.dma_semaphore, #tpu.memory_space<semaphore_mem>> -> memref<!tpu.dma_semaphore, #tpu.memory_space<semaphore_mem>>
    tpu.enqueue_dma source(%50 : memref<128xf32, #tpu.memory_space<any>>) target(%52 : memref<128xf32, #tpu.memory_space<vmem>>) target_semaphore(%54 : memref<!tpu.dma_semaphore, #tpu.memory_space<semaphore_mem>>)
    %c5_i32_20 = arith.constant 5 : i32
    %c5_i32_21 = arith.constant 5 : i32
    %c0_i32_22 = arith.constant 0 : i32
    %55 = tpu.memref_slice %arg2[%18, %c0_i32_22] : memref<65x128xf32, #tpu.memory_space<any>> -> memref<1x128xf32, #tpu.memory_space<any>>
    %56 = tpu.memref_squeeze %55 : memref<1x128xf32, #tpu.memory_space<any>> -> memref<128xf32, #tpu.memory_space<any>>
    %c0_i32_23 = arith.constant 0 : i32
    %57 = tpu.memref_slice %arg4[%c5_i32_20, %c0_i32_23] : memref<8x128xf32, #tpu.memory_space<vmem>> -> memref<1x128xf32, #tpu.memory_space<vmem>>
    %58 = tpu.memref_squeeze %57 : memref<1x128xf32, #tpu.memory_space<vmem>> -> memref<128xf32, #tpu.memory_space<vmem>>
    %59 = tpu.memref_slice %arg5[%c5_i32_21] : memref<8x!tpu.dma_semaphore, #tpu.memory_space<semaphore_mem>> -> memref<1x!tpu.dma_semaphore, #tpu.memory_space<semaphore_mem>>
    %60 = tpu.memref_squeeze %59 : memref<1x!tpu.dma_semaphore, #tpu.memory_space<semaphore_mem>> -> memref<!tpu.dma_semaphore, #tpu.memory_space<semaphore_mem>>
    tpu.enqueue_dma source(%56 : memref<128xf32, #tpu.memory_space<any>>) target(%58 : memref<128xf32, #tpu.memory_space<vmem>>) target_semaphore(%60 : memref<!tpu.dma_semaphore, #tpu.memory_space<semaphore_mem>>)
    %c6_i32_24 = arith.constant 6 : i32
    %c6_i32_25 = arith.constant 6 : i32
    %c0_i32_26 = arith.constant 0 : i32
    %61 = tpu.memref_slice %arg2[%21, %c0_i32_26] : memref<65x128xf32, #tpu.memory_space<any>> -> memref<1x128xf32, #tpu.memory_space<any>>
    %62 = tpu.memref_squeeze %61 : memref<1x128xf32, #tpu.memory_space<any>> -> memref<128xf32, #tpu.memory_space<any>>
    %c0_i32_27 = arith.constant 0 : i32
    %63 = tpu.memref_slice %arg4[%c6_i32_24, %c0_i32_27] : memref<8x128xf32, #tpu.memory_space<vmem>> -> memref<1x128xf32, #tpu.memory_space<vmem>>
    %64 = tpu.memref_squeeze %63 : memref<1x128xf32, #tpu.memory_space<vmem>> -> memref<128xf32, #tpu.memory_space<vmem>>
    %65 = tpu.memref_slice %arg5[%c6_i32_25] : memref<8x!tpu.dma_semaphore, #tpu.memory_space<semaphore_mem>> -> memref<1x!tpu.dma_semaphore, #tpu.memory_space<semaphore_mem>>
    %66 = tpu.memref_squeeze %65 : memref<1x!tpu.dma_semaphore, #tpu.memory_space<semaphore_mem>> -> memref<!tpu.dma_semaphore, #tpu.memory_space<semaphore_mem>>
    tpu.enqueue_dma source(%62 : memref<128xf32, #tpu.memory_space<any>>) target(%64 : memref<128xf32, #tpu.memory_space<vmem>>) target_semaphore(%66 : memref<!tpu.dma_semaphore, #tpu.memory_space<semaphore_mem>>)
    %c7_i32_28 = arith.constant 7 : i32
    %c7_i32_29 = arith.constant 7 : i32
    %c0_i32_30 = arith.constant 0 : i32
    %67 = tpu.memref_slice %arg2[%24, %c0_i32_30] : memref<65x128xf32, #tpu.memory_space<any>> -> memref<1x128xf32, #tpu.memory_space<any>>
    %68 = tpu.memref_squeeze %67 : memref<1x128xf32, #tpu.memory_space<any>> -> memref<128xf32, #tpu.memory_space<any>>
    %c0_i32_31 = arith.constant 0 : i32
    %69 = tpu.memref_slice %arg4[%c7_i32_28, %c0_i32_31] : memref<8x128xf32, #tpu.memory_space<vmem>> -> memref<1x128xf32, #tpu.memory_space<vmem>>
    %70 = tpu.memref_squeeze %69 : memref<1x128xf32, #tpu.memory_space<vmem>> -> memref<128xf32, #tpu.memory_space<vmem>>
    %71 = tpu.memref_slice %arg5[%c7_i32_29] : memref<8x!tpu.dma_semaphore, #tpu.memory_space<semaphore_mem>> -> memref<1x!tpu.dma_semaphore, #tpu.memory_space<semaphore_mem>>
    %72 = tpu.memref_squeeze %71 : memref<1x!tpu.dma_semaphore, #tpu.memory_space<semaphore_mem>> -> memref<!tpu.dma_semaphore, #tpu.memory_space<semaphore_mem>>
    tpu.enqueue_dma source(%68 : memref<128xf32, #tpu.memory_space<any>>) target(%70 : memref<128xf32, #tpu.memory_space<vmem>>) target_semaphore(%72 : memref<!tpu.dma_semaphore, #tpu.memory_space<semaphore_mem>>)
    %c0_i32_32 = arith.constant 0 : i32
    %c0_i32_33 = arith.constant 0 : i32
    %c0_i32_34 = arith.constant 0 : i32
    %c0_i32_35 = arith.constant 0 : i32
    %73 = tpu.memref_slice %arg2[%c0_i32_32, %c0_i32_35] : memref<65x128xf32, #tpu.memory_space<any>> -> memref<1x128xf32, #tpu.memory_space<any>>
    %74 = tpu.memref_squeeze %73 : memref<1x128xf32, #tpu.memory_space<any>> -> memref<128xf32, #tpu.memory_space<any>>
    %c0_i32_36 = arith.constant 0 : i32
    %75 = tpu.memref_slice %arg4[%c0_i32_33, %c0_i32_36] : memref<8x128xf32, #tpu.memory_space<vmem>> -> memref<1x128xf32, #tpu.memory_space<vmem>>
    %76 = tpu.memref_squeeze %75 : memref<1x128xf32, #tpu.memory_space<vmem>> -> memref<128xf32, #tpu.memory_space<vmem>>
    %77 = tpu.memref_slice %arg5[%c0_i32_34] : memref<8x!tpu.dma_semaphore, #tpu.memory_space<semaphore_mem>> -> memref<1x!tpu.dma_semaphore, #tpu.memory_space<semaphore_mem>>
    %78 = tpu.memref_squeeze %77 : memref<1x!tpu.dma_semaphore, #tpu.memory_space<semaphore_mem>> -> memref<!tpu.dma_semaphore, #tpu.memory_space<semaphore_mem>>
    tpu.wait_dma2 semaphore(%78 : memref<!tpu.dma_semaphore, #tpu.memory_space<semaphore_mem>>) src(%74 : memref<128xf32, #tpu.memory_space<any>>) dst(%76 : memref<128xf32, #tpu.memory_space<vmem>>)
    %c0_i32_37 = arith.constant 0 : i32
    %c1_i32_38 = arith.constant 1 : i32
    %c1_i32_39 = arith.constant 1 : i32
    %c0_i32_40 = arith.constant 0 : i32
    %79 = tpu.memref_slice %arg2[%c0_i32_37, %c0_i32_40] : memref<65x128xf32, #tpu.memory_space<any>> -> memref<1x128xf32, #tpu.memory_space<any>>
    %80 = tpu.memref_squeeze %79 : memref<1x128xf32, #tpu.memory_space<any>> -> memref<128xf32, #tpu.memory_space<any>>
    %c0_i32_41 = arith.constant 0 : i32
    %81 = tpu.memref_slice %arg4[%c1_i32_38, %c0_i32_41] : memref<8x128xf32, #tpu.memory_space<vmem>> -> memref<1x128xf32, #tpu.memory_space<vmem>>
    %82 = tpu.memref_squeeze %81 : memref<1x128xf32, #tpu.memory_space<vmem>> -> memref<128xf32, #tpu.memory_space<vmem>>
    %83 = tpu.memref_slice %arg5[%c1_i32_39] : memref<8x!tpu.dma_semaphore, #tpu.memory_space<semaphore_mem>> -> memref<1x!tpu.dma_semaphore, #tpu.memory_space<semaphore_mem>>
    %84 = tpu.memref_squeeze %83 : memref<1x!tpu.dma_semaphore, #tpu.memory_space<semaphore_mem>> -> memref<!tpu.dma_semaphore, #tpu.memory_space<semaphore_mem>>
    tpu.wait_dma2 semaphore(%84 : memref<!tpu.dma_semaphore, #tpu.memory_space<semaphore_mem>>) src(%80 : memref<128xf32, #tpu.memory_space<any>>) dst(%82 : memref<128xf32, #tpu.memory_space<vmem>>)
    %c0_i32_42 = arith.constant 0 : i32
    %c2_i32_43 = arith.constant 2 : i32
    %c2_i32_44 = arith.constant 2 : i32
    %c0_i32_45 = arith.constant 0 : i32
    %85 = tpu.memref_slice %arg2[%c0_i32_42, %c0_i32_45] : memref<65x128xf32, #tpu.memory_space<any>> -> memref<1x128xf32, #tpu.memory_space<any>>
    %86 = tpu.memref_squeeze %85 : memref<1x128xf32, #tpu.memory_space<any>> -> memref<128xf32, #tpu.memory_space<any>>
    %c0_i32_46 = arith.constant 0 : i32
    %87 = tpu.memref_slice %arg4[%c2_i32_43, %c0_i32_46] : memref<8x128xf32, #tpu.memory_space<vmem>> -> memref<1x128xf32, #tpu.memory_space<vmem>>
    %88 = tpu.memref_squeeze %87 : memref<1x128xf32, #tpu.memory_space<vmem>> -> memref<128xf32, #tpu.memory_space<vmem>>
    %89 = tpu.memref_slice %arg5[%c2_i32_44] : memref<8x!tpu.dma_semaphore, #tpu.memory_space<semaphore_mem>> -> memref<1x!tpu.dma_semaphore, #tpu.memory_space<semaphore_mem>>
    %90 = tpu.memref_squeeze %89 : memref<1x!tpu.dma_semaphore, #tpu.memory_space<semaphore_mem>> -> memref<!tpu.dma_semaphore, #tpu.memory_space<semaphore_mem>>
    tpu.wait_dma2 semaphore(%90 : memref<!tpu.dma_semaphore, #tpu.memory_space<semaphore_mem>>) src(%86 : memref<128xf32, #tpu.memory_space<any>>) dst(%88 : memref<128xf32, #tpu.memory_space<vmem>>)
    %c0_i32_47 = arith.constant 0 : i32
    %c3_i32_48 = arith.constant 3 : i32
    %c3_i32_49 = arith.constant 3 : i32
    %c0_i32_50 = arith.constant 0 : i32
    %91 = tpu.memref_slice %arg2[%c0_i32_47, %c0_i32_50] : memref<65x128xf32, #tpu.memory_space<any>> -> memref<1x128xf32, #tpu.memory_space<any>>
    %92 = tpu.memref_squeeze %91 : memref<1x128xf32, #tpu.memory_space<any>> -> memref<128xf32, #tpu.memory_space<any>>
    %c0_i32_51 = arith.constant 0 : i32
    %93 = tpu.memref_slice %arg4[%c3_i32_48, %c0_i32_51] : memref<8x128xf32, #tpu.memory_space<vmem>> -> memref<1x128xf32, #tpu.memory_space<vmem>>
    %94 = tpu.memref_squeeze %93 : memref<1x128xf32, #tpu.memory_space<vmem>> -> memref<128xf32, #tpu.memory_space<vmem>>
    %95 = tpu.memref_slice %arg5[%c3_i32_49] : memref<8x!tpu.dma_semaphore, #tpu.memory_space<semaphore_mem>> -> memref<1x!tpu.dma_semaphore, #tpu.memory_space<semaphore_mem>>
    %96 = tpu.memref_squeeze %95 : memref<1x!tpu.dma_semaphore, #tpu.memory_space<semaphore_mem>> -> memref<!tpu.dma_semaphore, #tpu.memory_space<semaphore_mem>>
    tpu.wait_dma2 semaphore(%96 : memref<!tpu.dma_semaphore, #tpu.memory_space<semaphore_mem>>) src(%92 : memref<128xf32, #tpu.memory_space<any>>) dst(%94 : memref<128xf32, #tpu.memory_space<vmem>>)
    %c0_i32_52 = arith.constant 0 : i32
    %c4_i32_53 = arith.constant 4 : i32
    %c4_i32_54 = arith.constant 4 : i32
    %c0_i32_55 = arith.constant 0 : i32
    %97 = tpu.memref_slice %arg2[%c0_i32_52, %c0_i32_55] : memref<65x128xf32, #tpu.memory_space<any>> -> memref<1x128xf32, #tpu.memory_space<any>>
    %98 = tpu.memref_squeeze %97 : memref<1x128xf32, #tpu.memory_space<any>> -> memref<128xf32, #tpu.memory_space<any>>
    %c0_i32_56 = arith.constant 0 : i32
    %99 = tpu.memref_slice %arg4[%c4_i32_53, %c0_i32_56] : memref<8x128xf32, #tpu.memory_space<vmem>> -> memref<1x128xf32, #tpu.memory_space<vmem>>
    %100 = tpu.memref_squeeze %99 : memref<1x128xf32, #tpu.memory_space<vmem>> -> memref<128xf32, #tpu.memory_space<vmem>>
    %101 = tpu.memref_slice %arg5[%c4_i32_54] : memref<8x!tpu.dma_semaphore, #tpu.memory_space<semaphore_mem>> -> memref<1x!tpu.dma_semaphore, #tpu.memory_space<semaphore_mem>>
    %102 = tpu.memref_squeeze %101 : memref<1x!tpu.dma_semaphore, #tpu.memory_space<semaphore_mem>> -> memref<!tpu.dma_semaphore, #tpu.memory_space<semaphore_mem>>
    tpu.wait_dma2 semaphore(%102 : memref<!tpu.dma_semaphore, #tpu.memory_space<semaphore_mem>>) src(%98 : memref<128xf32, #tpu.memory_space<any>>) dst(%100 : memref<128xf32, #tpu.memory_space<vmem>>)
    %c0_i32_57 = arith.constant 0 : i32
    %c5_i32_58 = arith.constant 5 : i32
    %c5_i32_59 = arith.constant 5 : i32
    %c0_i32_60 = arith.constant 0 : i32
    %103 = tpu.memref_slice %arg2[%c0_i32_57, %c0_i32_60] : memref<65x128xf32, #tpu.memory_space<any>> -> memref<1x128xf32, #tpu.memory_space<any>>
    %104 = tpu.memref_squeeze %103 : memref<1x128xf32, #tpu.memory_space<any>> -> memref<128xf32, #tpu.memory_space<any>>
    %c0_i32_61 = arith.constant 0 : i32
    %105 = tpu.memref_slice %arg4[%c5_i32_58, %c0_i32_61] : memref<8x128xf32, #tpu.memory_space<vmem>> -> memref<1x128xf32, #tpu.memory_space<vmem>>
    %106 = tpu.memref_squeeze %105 : memref<1x128xf32, #tpu.memory_space<vmem>> -> memref<128xf32, #tpu.memory_space<vmem>>
    %107 = tpu.memref_slice %arg5[%c5_i32_59] : memref<8x!tpu.dma_semaphore, #tpu.memory_space<semaphore_mem>> -> memref<1x!tpu.dma_semaphore, #tpu.memory_space<semaphore_mem>>
    %108 = tpu.memref_squeeze %107 : memref<1x!tpu.dma_semaphore, #tpu.memory_space<semaphore_mem>> -> memref<!tpu.dma_semaphore, #tpu.memory_space<semaphore_mem>>
    tpu.wait_dma2 semaphore(%108 : memref<!tpu.dma_semaphore, #tpu.memory_space<semaphore_mem>>) src(%104 : memref<128xf32, #tpu.memory_space<any>>) dst(%106 : memref<128xf32, #tpu.memory_space<vmem>>)
    %c0_i32_62 = arith.constant 0 : i32
    %c6_i32_63 = arith.constant 6 : i32
    %c6_i32_64 = arith.constant 6 : i32
    %c0_i32_65 = arith.constant 0 : i32
    %109 = tpu.memref_slice %arg2[%c0_i32_62, %c0_i32_65] : memref<65x128xf32, #tpu.memory_space<any>> -> memref<1x128xf32, #tpu.memory_space<any>>
    %110 = tpu.memref_squeeze %109 : memref<1x128xf32, #tpu.memory_space<any>> -> memref<128xf32, #tpu.memory_space<any>>
    %c0_i32_66 = arith.constant 0 : i32
    %111 = tpu.memref_slice %arg4[%c6_i32_63, %c0_i32_66] : memref<8x128xf32, #tpu.memory_space<vmem>> -> memref<1x128xf32, #tpu.memory_space<vmem>>
    %112 = tpu.memref_squeeze %111 : memref<1x128xf32, #tpu.memory_space<vmem>> -> memref<128xf32, #tpu.memory_space<vmem>>
    %113 = tpu.memref_slice %arg5[%c6_i32_64] : memref<8x!tpu.dma_semaphore, #tpu.memory_space<semaphore_mem>> -> memref<1x!tpu.dma_semaphore, #tpu.memory_space<semaphore_mem>>
    %114 = tpu.memref_squeeze %113 : memref<1x!tpu.dma_semaphore, #tpu.memory_space<semaphore_mem>> -> memref<!tpu.dma_semaphore, #tpu.memory_space<semaphore_mem>>
    tpu.wait_dma2 semaphore(%114 : memref<!tpu.dma_semaphore, #tpu.memory_space<semaphore_mem>>) src(%110 : memref<128xf32, #tpu.memory_space<any>>) dst(%112 : memref<128xf32, #tpu.memory_space<vmem>>)
    %c0_i32_67 = arith.constant 0 : i32
    %c7_i32_68 = arith.constant 7 : i32
    %c7_i32_69 = arith.constant 7 : i32
    %c0_i32_70 = arith.constant 0 : i32
    %115 = tpu.memref_slice %arg2[%c0_i32_67, %c0_i32_70] : memref<65x128xf32, #tpu.memory_space<any>> -> memref<1x128xf32, #tpu.memory_space<any>>
    %116 = tpu.memref_squeeze %115 : memref<1x128xf32, #tpu.memory_space<any>> -> memref<128xf32, #tpu.memory_space<any>>
    %c0_i32_71 = arith.constant 0 : i32
    %117 = tpu.memref_slice %arg4[%c7_i32_68, %c0_i32_71] : memref<8x128xf32, #tpu.memory_space<vmem>> -> memref<1x128xf32, #tpu.memory_space<vmem>>
    %118 = tpu.memref_squeeze %117 : memref<1x128xf32, #tpu.memory_space<vmem>> -> memref<128xf32, #tpu.memory_space<vmem>>
    %119 = tpu.memref_slice %arg5[%c7_i32_69] : memref<8x!tpu.dma_semaphore, #tpu.memory_space<semaphore_mem>> -> memref<1x!tpu.dma_semaphore, #tpu.memory_space<semaphore_mem>>
    %120 = tpu.memref_squeeze %119 : memref<1x!tpu.dma_semaphore, #tpu.memory_space<semaphore_mem>> -> memref<!tpu.dma_semaphore, #tpu.memory_space<semaphore_mem>>
    tpu.wait_dma2 semaphore(%120 : memref<!tpu.dma_semaphore, #tpu.memory_space<semaphore_mem>>) src(%116 : memref<128xf32, #tpu.memory_space<any>>) dst(%118 : memref<128xf32, #tpu.memory_space<vmem>>)
    %c0 = arith.constant 0 : index
    %c0_72 = arith.constant 0 : index
    %121 = vector.load %arg4[%c0, %c0_72] : memref<8x128xf32, #tpu.memory_space<vmem>>, vector<8x128xf32>
    %c0_73 = arith.constant 0 : index
    %c0_74 = arith.constant 0 : index
    %122 = vector.load %arg3[%c0_73, %c0_74] : memref<8x128xf32, #tpu.memory_space<vmem>>, vector<8x128xf32>
    tpu.vector_store %arg3[%c0_73, %c0_74], %121 {strides = array<i32>} : memref<8x128xf32, #tpu.memory_space<vmem>>, vector<8x128xf32>,
    return
  }
  func.func @transform_1(%arg0: i32, %arg1: memref<16xi32, #tpu.memory_space<smem>>) -> (i32, i32) {
    %c0_i32 = arith.constant 0 : i32
    %c0_i32_0 = arith.constant 0 : i32
    return %arg0, %c0_i32 : i32, i32
  }
}

</mosaic_0001>

<bundles_post_ra>
// kernel: bigram_forward.1
= control target key start
LH: loop header
LB: loop body
LE: loop exit
PB: predicated region body
PF: predicated region fallthrough
CT: control target
= control target key end

     0   :  { %s775_s0 = inlined_call_operand.vmem [shape: s32[16], index: 0, kind: input, shape index: {}]   ;;  %s776_s1 = inlined_call_operand.vmem [shape: f32[65,128], index: 1, kind: input, shape index: {}]   ;;  %s777_s2 = inlined_call_operand.vmem [shape: f32[16,128], index: 2, kind: output, shape index: {}]  }
   0x1   :  { %s7_s11 = sshll.u32 %s775_s0, 4  ;;  %s8_s11 = int_to_ptr.vmem [resolvable:$true] %s7_s11 }
   0x2   :  { %s673_s12 = scalar_lea.vmem %s8_s11, 16  ;;  %p678_p1 = scmp.lt.s32.totalorder %s8_s11, %s8_s11 }
   0x3   :  { %p674_p0 = scmp.ne.s32.totalorder %s8_s11, %s673_s12  ;;  %p679_p2 = scmp.lt.s32.totalorder %s673_s12, %s673_s12 }
   0x5   :  { %p680_p3 = por %p679_p2, %p678_p1 }
   0x7   :  { %p681_p4 = pnand %p680_p3, %p674_p0 }
   0x9   :  { %684 = shalt.err (!%p681_p4)  }
   0xa   :  { %s711_s13 = smov [#allocation5]  }
   0xb   :  { %10 = dma.vmem_to_smem %s8_s11, 16, %s711_s13, [#allocation4] }
   0xc   :  { %689 = dma.done.wait [#allocation4], 16 }
   0xd   :  { %690 = vsyncadd [#allocation4], 4294967280 }
   0xe   :  { %12 = sfence }
   0xf   :  { %s730_s14 = smov 0  }
  0x10 LB: > { %p651_p5 = scmp.ge.s32.totalorder %s709_s14, 2  ;;  %s709_s14 = sphi %s730_s14, %s18_s14  }
  0x11   : > { %p50_p6 = scmp.lt.s32.totalorder (!%p651_p5), %s709_s14, 1  ;;  %s653_s0 = sshll.u32 (!%p651_p5), %s709_s14, 3 }
  0x12   : > { %43 = sbr.rel (%p651_p5) target bundleno = 68 (0x44), region = 12  ;;  %s55_s15 = sld [smem:[#allocation5 + %s653_s0]] (!%p651_p5) }
  0x13   : > { %s56_s16 = sadd.s32 (!%p651_p5), 1, %s653_s0  ;;  %s58_s19 = sadd.s32 (!%p651_p5), 2, %s653_s0 }
  0x14   : > { %s57_s18 = sld [smem:[#allocation5 + %s56_s16]] (!%p651_p5)  ;;  %s60_s25 = sadd.s32 (!%p651_p5), 3, %s653_s0 }
  0x15   : > { %s59_s21 = sld [smem:[#allocation5 + %s58_s19]] (!%p651_p5)  ;;  %s62_s27 = sadd.s32 (!%p651_p5), 4, %s653_s0 }
  0x16   : > { %s61_s26 = sld [smem:[#allocation5 + %s60_s25]] (!%p651_p5)  ;;  %s64_s29 = sadd.s32 (!%p651_p5), 5, %s653_s0 }
  0x17   : > { %s63_s28 = sld [smem:[#allocation5 + %s62_s27]] (!%p651_p5)  ;;  %s66_s3 = sadd.s32 (!%p651_p5), 6, %s653_s0 }
  0x18   : > { %s65_s30 = sld [smem:[#allocation5 + %s64_s29]] (!%p651_p5)  ;;  %s68_s5 = sadd.s32 (!%p651_p5), 7, %s653_s0 }
  0x19   : > { %s51_s17 = scalar_select %p50_p6, %s709_s14, 1 }
  0x1a   : > { %s67_s4 = sld [smem:[#allocation5 + %s66_s3]]  ;;  %s70_s9 = scalar_lea.vmem %s776_s1, %s55_s15 }
  0x1b   : > { %s652_s20 = sshll.u32 %s51_s17, 3  ;;  %s744_s6 = sld [smem:[#allocation5 + %s68_s5]]  ;;  %v88_v0 = vld [vmem:[%s70_s9] sm:$0x1] }
  0x1c   : > { %s742_s24 = scalar_lea.vmem %s777_s2, %s652_s20  ;;  %89 = vst [vmem:[#allocation2] sm:$0x1] %v88_v0 }
  0x1d   : > { %114 = vsyncadd [#allocation3], 16  ;;  %s115_s12 = scalar_lea.vmem %s776_s1, %s57_s18 }
  0x1e   : > { %v135_v1 = vld [vmem:[%s115_s12] sm:$0x1] }
  0x1f   : > { %136 = vst [vmem:[#allocation2 + $0x1] sm:$0x1] %v135_v1 }
  0x20   : > { %161 = vsyncadd [#allocation3 + $0x1], 16  ;;  %s162_s0 = scalar_lea.vmem %s776_s1, %s59_s21 }
  0x21   : > { %v182_v2 = vld [vmem:[%s162_s0] sm:$0x1] }
  0x22   : > { %183 = vst [vmem:[#allocation2 + $0x2] sm:$0x1] %v182_v2 }
  0x23   : > { %208 = vsyncadd [#allocation3 + $0x2], 16  ;;  %s209_s15 = scalar_lea.vmem %s776_s1, %s61_s26 }
  0x24   : > { %v229_v3 = vld [vmem:[%s209_s15] sm:$0x1] }
  0x25   : > { %230 = vst [vmem:[#allocation2 + $0x3] sm:$0x1] %v229_v3 }
  0x26   : > { %255 = vsyncadd [#allocation3 + $0x3], 16  ;;  %s256_s18 = scalar_lea.vmem %s776_s1, %s63_s28 }
  0x27   : > { %v276_v4 = vld [vmem:[%s256_s18] sm:$0x1] }
  0x28   : > { %277 = vst [vmem:[#allocation2 + $0x4] sm:$0x1] %v276_v4 }
  0x29   : > { %302 = vsyncadd [#allocation3 + $0x4], 16  ;;  %s303_s21 = scalar_lea.vmem %s776_s1, %s65_s30 }
  0x2a   : > { %v323_v5 = vld [vmem:[%s303_s21] sm:$0x1] }
  0x2b   : > { %324 = vst [vmem:[#allocation2 + $0x5] sm:$0x1] %v323_v5 }
  0x2c   : > { %349 = vsyncadd [#allocation3 + $0x5], 16  ;;  %s350_s26 = scalar_lea.vmem %s776_s1, %s67_s4 }
  0x2d   : > { %v370_v6 = vld [vmem:[%s350_s26] sm:$0x1] }
  0x2e   : > { %371 = vst [vmem:[#allocation2 + $0x6] sm:$0x1] %v370_v6 }
  0x2f   : > { %396 = vsyncadd [#allocation3 + $0x6], 16  ;;  %s397_s5 = scalar_lea.vmem %s776_s1, %s744_s6 }
  0x30   : > { %v417_v7 = vld [vmem:[%s397_s5] sm:$0x1] }
  0x31   : > { %418 = vst [vmem:[#allocation2 + $0x7] sm:$0x1] %v417_v7 }
  0x32   : > { %443 = vsyncadd [#allocation3 + $0x7], 16 }
  0x33   : > { %691 = dma.done.wait [#allocation3], 16 }
  0x34   : > { %692 = vsyncadd [#allocation3], 4294967280 }
  0x35   : > { %693 = dma.done.wait [#allocation3 + $0x1], 16 }
  0x36   : > { %694 = vsyncadd [#allocation3 + $0x1], 4294967280 }
  0x37   : > { %695 = dma.done.wait [#allocation3 + $0x2], 16 }
  0x38   : > { %696 = vsyncadd [#allocation3 + $0x2], 4294967280 }
  0x39   : > { %697 = dma.done.wait [#allocation3 + $0x3], 16 }
  0x3a   : > { %698 = vsyncadd [#allocation3 + $0x3], 4294967280 }
  0x3b   : > { %699 = dma.done.wait [#allocation3 + $0x4], 16 }
  0x3c   : > { %700 = vsyncadd [#allocation3 + $0x4], 4294967280 }
  0x3d   : > { %701 = dma.done.wait [#allocation3 + $0x5], 16 }
  0x3e   : > { %702 = vsyncadd [#allocation3 + $0x5], 4294967280 }
  0x3f   : > { %703 = dma.done.wait [#allocation3 + $0x6], 16 }
  0x40   : > { %704 = vsyncadd [#allocation3 + $0x6], 4294967280 }
  0x41   : > { %705 = dma.done.wait [#allocation3 + $0x7], 16 }
  0x42   : > { %706 = vsyncadd [#allocation3 + $0x7], 4294967280  ;;  %v460_v8 = vld [vmem:[#allocation2] sm:$0xff] }
  0x43   : > { %461 = vst [vmem:[%s742_s24] sm:$0xff] %v460_v8 }
  0x44 PF: > { %s18_s14 = sadd.s32 1, %s709_s14  }
  0x45   : > { %p15_p7 = scmp.ge.s32.totalorder %s18_s14, 3  }
  0x47   :  { %17 = sbr.rel (!%p15_p7) target bundleno = 16 (0x10), region = 388 }
  0x4e   :  { %481 = vsyncmov [#allocation3] }
  0x51   :  { %s482_s30 = vpop.sfrf %481 }
  0x52   :  { %p656_p8 = scmp.ne.s32.totalorder %s482_s30, 0 }
  0x54   :  { %486 = shalt.err (%p656_p8)  }
  0x55   :  { %488 = vsyncmov [#allocation3 + $0x1] }
  0x58   :  { %s489_s4 = vpop.sfrf %488 }
  0x59   :  { %p657_p9 = scmp.ne.s32.totalorder %s489_s4, 0 }
  0x5b   :  { %493 = shalt.err (%p657_p9)  }
  0x5c   :  { %495 = vsyncmov [#allocation3 + $0x2] }
  0x5f   :  { %s496_s6 = vpop.sfrf %495 }
  0x60   :  { %p658_p10 = scmp.ne.s32.totalorder %s496_s6, 0 }
  0x62   :  { %500 = shalt.err (%p658_p10)  }
  0x63   :  { %502 = vsyncmov [#allocation3 + $0x3] }
  0x66   :  { %s503_s24 = vpop.sfrf %502 }
  0x67   :  { %p659_p11 = scmp.ne.s32.totalorder %s503_s24, 0 }
  0x69   :  { %507 = shalt.err (%p659_p11)  }
  0x6a   :  { %509 = vsyncmov [#allocation3 + $0x4] }
  0x6d   :  { %s510_s7 = vpop.sfrf %509 }
  0x6e   :  { %p660_p12 = scmp.ne.s32.totalorder %s510_s7, 0 }
  0x70   :  { %514 = shalt.err (%p660_p12)  }
  0x71   :  { %516 = vsyncmov [#allocation3 + $0x5] }
  0x74   :  { %s517_s1 = vpop.sfrf %516 }
  0x75   :  { %p661_p13 = scmp.ne.s32.totalorder %s517_s1, 0 }
  0x77   :  { %521 = shalt.err (%p661_p13)  }
  0x78   :  { %523 = vsyncmov [#allocation3 + $0x6] }
  0x7b   :  { %s524_s2 = vpop.sfrf %523 }
  0x7c   :  { %p662_p0 = scmp.ne.s32.totalorder %s524_s2, 0 }
  0x7e   :  { %528 = shalt.err (%p662_p0)  }
  0x7f   :  { %530 = vsyncmov [#allocation3 + $0x7] }
  0x82   :  { %s531_s14 = vpop.sfrf %530 }
  0x83   :  { %p663_p1 = scmp.ne.s32.totalorder %s531_s14, 0 }
  0x85   :  { %535 = shalt.err (%p663_p1)  }

</bundles_post_ra>
